<compile_context>
chip_gen: v6e
topology: v6e:2x2x1
jax: 0.10.0
libtpu: 0.0.40
codegen_flags: <defaults>
</compile_context>

<pallas_src>
import jax
import jax.numpy as jnp
from jax.experimental import pallas as pl
from jax.experimental.pallas import tpu as pltpu

H1 = 256   # first hidden width
H2 = 128   # second hidden width


def _round_up(x, m):
    return ((x + m - 1) // m) * m


def critic_kernel(s_ref, a_ref, w1s_ref, w1a_ref, w2_ref, c_ref, o_ref):
    # MXU operands in bf16, f32 accumulation; bias/ReLU in f32 on the VPU.
    s = s_ref[...].astype(jnp.bfloat16)            # [tb, S]
    a = a_ref[...].astype(jnp.bfloat16)            # [tb, A]

    # Packed small constants (fetched once, VMEM resident).
    b1 = c_ref[0:1, :]                             # [1, 256]
    b2 = c_ref[1:2, 0:H2]                          # [1, 128]
    w3 = c_ref[1:2, H2:H2 + H2]                    # [1, 128]  (w3^T row)
    b3 = c_ref[2:3, 0:1]                           # [1, 1]

    # Layer 1 (fused concat): x @ W1 == s @ W1[:S] + a @ W1[S:]
    h1 = jnp.dot(s, w1s_ref[...], preferred_element_type=jnp.float32)     # [tb, 256]
    h1 = h1 + jnp.dot(a, w1a_ref[...], preferred_element_type=jnp.float32)
    h1 = jnp.maximum(h1 + b1, 0.0)

    # Layer 2
    h2 = jnp.dot(h1.astype(jnp.bfloat16), w2_ref[...],
                 preferred_element_type=jnp.float32)                      # [tb, 128]
    h2 = jnp.maximum(h2 + b2, 0.0)

    # Layer 3 (128 -> 1): compute w3 @ h2^T (same contraction pattern as q @ k^T in
    # flash attention) so the result is already the lane-dense row [*, tb].
    # w3 is sublane-broadcast to 8 rows so the MXU LHS is a full sublane tile.
    w3_tile = jnp.broadcast_to(w3, (8, H2))                               # [8, 128]
    q = jax.lax.dot_general(w3_tile, h2, (((1,), (1,)), ((), ())),
                            preferred_element_type=jnp.float32)           # [8, tb]
    o_ref[...] = (q[0:1, :] + b3).astype(o_ref.dtype)                     # [1, tb]


def prepare_critic_params(params, total_state_dim):
    """One-time weight prep, hoisted out of the per-call path.

    Splits W1 for the fused concat, casts MXU operands to bf16, and packs all the
    small f32 constants (b1, b2, w3^T, b3) into a single (3, 256) block.
    """
    w1, b1, w2, b2, w3, b3 = params
    s_dim = total_state_dim
    w1s = w1[:s_dim].astype(jnp.bfloat16)          # [S, 256]
    w1a = w1[s_dim:].astype(jnp.bfloat16)          # [A, 256]
    w2b = w2.astype(jnp.bfloat16)                  # [256, 128]
    consts = jnp.zeros((3, H1), jnp.float32)
    consts = consts.at[0, :].set(b1.reshape(-1))           # b1  (256)
    consts = consts.at[1, :H2].set(b2.reshape(-1))         # b2  (128)
    consts = consts.at[1, H2:].set(w3.reshape(-1))         # w3  (128,1) -> row
    consts = consts.at[2, 0].set(b3.reshape(-1)[0])        # b3  scalar
    return (w1s, w1a, w2b, consts)


def _choose_tile(batch, block_rows):
    # Row tile: multiple of 128 (lane-dense output + sublane alignment), capped at
    # block_rows, and sized so there are >= 2 grid steps when the batch allows it
    # (v7x dual-TC sharding); v5e/v6e just get fewer, bigger steps.
    block_rows = max(128, (block_rows // 128) * 128)
    return min(block_rows, _round_up(pl.cdiv(batch, 2), 128))


def critic_forward(states, actions, prepped_params, block_rows=1024):
    """states: [B, S], actions: [B, A]; returns Q-values [B, 1] (float32)."""
    w1s, w1a, w2b, consts = prepped_params
    B, S = states.shape
    A = actions.shape[1]

    tb = _choose_tile(B, block_rows)
    n_tiles = pl.cdiv(B, tb)

    out = pl.pallas_call(
        critic_kernel,
        out_shape=jax.ShapeDtypeStruct((1, n_tiles * tb), jnp.float32),
        grid_spec=pltpu.PrefetchScalarGridSpec(
            num_scalar_prefetch=0,
            grid=(n_tiles,),
            in_specs=[
                pl.BlockSpec((tb, S), lambda i: (i, 0)),      # states tile (pipelined)
                pl.BlockSpec((tb, A), lambda i: (i, 0)),      # actions tile (pipelined)
                pl.BlockSpec(w1s.shape, lambda i: (0, 0)),    # weights: constant index
                pl.BlockSpec(w1a.shape, lambda i: (0, 0)),    #  -> fetched once,
                pl.BlockSpec(w2b.shape, lambda i: (0, 0)),    #     stay VMEM resident
                pl.BlockSpec(consts.shape, lambda i: (0, 0)), # packed b1/b2/w3/b3
            ],
            out_specs=pl.BlockSpec((1, tb), lambda i: (0, i)),  # lane-dense row per tile
        ),
        compiler_params=pltpu.CompilerParams(
            # batch axis is embarrassingly parallel -> shard across TCs on v7x
            dimension_semantics=("parallel",),
            vmem_limit_bytes=32 * 1024 * 1024,
        ),
    )(states, actions, w1s, w1a, w2b, consts)

    # Drop the garbage tail of the last partial tile and restore [B, 1].
    return out.reshape(-1)[:B].reshape(B, 1)


def init_critic_params(key, total_state_dim, total_action_dim):
    """Deterministic init matching nn.Linear's default U(-1/sqrt(fan_in), 1/sqrt(fan_in))."""
    dims = [(total_state_dim + total_action_dim, H1), (H1, H2), (H2, 1)]
    params = []
    for (fan_in, fan_out) in dims:
        key, kw, kb = jax.random.split(key, 3)
        bound = 1.0 / jnp.sqrt(fan_in)
        w = jax.random.uniform(kw, (fan_in, fan_out), jnp.float32, -bound, bound)
        b = jax.random.uniform(kb, (1, fan_out), jnp.float32, -bound, bound)
        params.extend([w, b])
    return tuple(params)


def critic_reference(states, actions, params):
    """Pure-JAX f32 reference matching the PyTorch module."""
    w1, b1, w2, b2, w3, b3 = params
    x = jnp.concatenate([states, actions], axis=-1)
    h1 = jnp.maximum(x @ w1 + b1, 0.0)
    h2 = jnp.maximum(h1 @ w2 + b2, 0.0)
    return h2 @ w3 + b3


if __name__ == "__main__":
    key = jax.random.PRNGKey(0)
    k_s, k_a, k_p = jax.random.split(key, 3)

    batch = 200                 # not a multiple of the tile -> exercises the partial block
    total_state_dim = 24
    total_action_dim = 8

    states = jax.random.normal(k_s, (batch, total_state_dim), jnp.float32)
    actions = jax.random.normal(k_a, (batch, total_action_dim), jnp.float32)

    params = init_critic_params(k_p, total_state_dim, total_action_dim)
    prepped = prepare_critic_params(params, total_state_dim)   # once, not per call

    out = critic_forward(states, actions, prepped)             # grid of 2 tiles (tb=128)
    out = jax.block_until_ready(out)

    ref = critic_reference(states, actions, params)
    assert out.shape == (batch, 1), out.shape
    # bf16 MXU inputs with f32 accumulation vs. pure-f32 reference -> loose tolerance
    assert jnp.allclose(out, ref, atol=5e-2, rtol=5e-2), float(jnp.max(jnp.abs(out - ref)))

    print("KERNEL_OK")
</pallas_src>

<mosaic_0001>
module attributes {stable_mosaic.version = 11 : i64} {
  func.func @critic_kernel(%arg0: i32, %arg1: memref<128x24xf32, #tpu.memory_space<vmem>>, %arg2: memref<128x8xf32, #tpu.memory_space<vmem>>, %arg3: memref<24x256xbf16, #tpu.memory_space<vmem>>, %arg4: memref<8x256xbf16, #tpu.memory_space<vmem>>, %arg5: memref<256x128xbf16, #tpu.memory_space<vmem>>, %arg6: memref<3x256xf32, #tpu.memory_space<vmem>>, %arg7: memref<1x128xf32, #tpu.memory_space<vmem>>) attributes {dimension_semantics = [#tpu.dimension_semantics<parallel>], iteration_bounds = array<i64: 2>, scalar_prefetch = 0 : i64, scratch_operands = 0 : i64, tpu.core_type = #tpu.core_type<tc>, window_params = [{transform_indices = @transform_0, window_bounds = array<i64: 128, 24>}, {transform_indices = @transform_1, window_bounds = array<i64: 128, 8>}, {pipeline_mode = #tpu.pipeline_mode<synchronous>, transform_indices = @transform_2, window_bounds = array<i64: 24, 256>}, {pipeline_mode = #tpu.pipeline_mode<synchronous>, transform_indices = @transform_3, window_bounds = array<i64: 8, 256>}, {pipeline_mode = #tpu.pipeline_mode<synchronous>, transform_indices = @transform_4, window_bounds = array<i64: 256, 128>}, {pipeline_mode = #tpu.pipeline_mode<synchronous>, transform_indices = @transform_5, window_bounds = array<i64: 3, 256>}, {transform_indices = @transform_6, window_bounds = array<i64: 1, 128>}]} {
    %c0 = arith.constant 0 : index
    %c0_0 = arith.constant 0 : index
    %0 = vector.load %arg1[%c0, %c0_0] : memref<128x24xf32, #tpu.memory_space<vmem>>, vector<128x24xf32>
    %1 = arith.truncf %0 : vector<128x24xf32> to vector<128x24xbf16>
    %c0_1 = arith.constant 0 : index
    %c0_2 = arith.constant 0 : index
    %2 = vector.load %arg2[%c0_1, %c0_2] : memref<128x8xf32, #tpu.memory_space<vmem>>, vector<128x8xf32>
    %3 = arith.truncf %2 : vector<128x8xf32> to vector<128x8xbf16>
    %c0_3 = arith.constant 0 : index
    %c0_4 = arith.constant 0 : index
    %4 = vector.load %arg6[%c0_3, %c0_4] : memref<3x256xf32, #tpu.memory_space<vmem>>, vector<1x256xf32>
    %c1 = arith.constant 1 : index
    %c0_5 = arith.constant 0 : index
    %5 = vector.load %arg6[%c1, %c0_5] : memref<3x256xf32, #tpu.memory_space<vmem>>, vector<1x128xf32>
    %c1_6 = arith.constant 1 : index
    %c128 = arith.constant 128 : index
    %6 = vector.load %arg6[%c1_6, %c128] : memref<3x256xf32, #tpu.memory_space<vmem>>, vector<1x128xf32>
    %c2 = arith.constant 2 : index
    %c0_7 = arith.constant 0 : index
    %7 = vector.load %arg6[%c2, %c0_7] : memref<3x256xf32, #tpu.memory_space<vmem>>, vector<1x1xf32>
    %c0_8 = arith.constant 0 : index
    %c0_9 = arith.constant 0 : index
    %8 = vector.load %arg3[%c0_8, %c0_9] : memref<24x256xbf16, #tpu.memory_space<vmem>>, vector<24x256xbf16>
    %cst = arith.constant dense<0.000000e+00> : vector<128x256xf32>
    %9 = tpu.matmul %1, %8, %cst {dimension_numbers = #tpu.dot_dimension_numbers<[1], [0], [0], [1], [0, 0, 1, 1], [], []>} : vector<128x24xbf16>, vector<24x256xbf16>, vector<128x256xf32> -> vector<128x256xf32>
    %c0_10 = arith.constant 0 : index
    %c0_11 = arith.constant 0 : index
    %10 = vector.load %arg4[%c0_10, %c0_11] : memref<8x256xbf16, #tpu.memory_space<vmem>>, vector<8x256xbf16>
    %cst_12 = arith.constant dense<0.000000e+00> : vector<128x256xf32>
    %11 = tpu.matmul %3, %10, %cst_12 {dimension_numbers = #tpu.dot_dimension_numbers<[1], [0], [0], [1], [0, 0, 1, 1], [], []>} : vector<128x8xbf16>, vector<8x256xbf16>, vector<128x256xf32> -> vector<128x256xf32>
    %12 = arith.addf %9, %11 : vector<128x256xf32>
    %13 = vector.broadcast %4 : vector<1x256xf32> to vector<128x256xf32>
    %14 = arith.addf %12, %13 : vector<128x256xf32>
    %cst_13 = arith.constant 0.000000e+00 : f32
    %15 = vector.broadcast %cst_13 : f32 to vector<128x256xf32>
    %16 = arith.maximumf %14, %15 : vector<128x256xf32>
    %17 = arith.truncf %16 : vector<128x256xf32> to vector<128x256xbf16>
    %c0_14 = arith.constant 0 : index
    %c0_15 = arith.constant 0 : index
    %18 = vector.load %arg5[%c0_14, %c0_15] : memref<256x128xbf16, #tpu.memory_space<vmem>>, vector<256x128xbf16>
    %cst_16 = arith.constant dense<0.000000e+00> : vector<128x128xf32>
    %19 = tpu.matmul %17, %18, %cst_16 {dimension_numbers = #tpu.dot_dimension_numbers<[1], [0], [0], [1], [0, 0, 1, 1], [], []>} : vector<128x256xbf16>, vector<256x128xbf16>, vector<128x128xf32> -> vector<128x128xf32>
    %20 = vector.broadcast %5 : vector<1x128xf32> to vector<128x128xf32>
    %21 = arith.addf %19, %20 : vector<128x128xf32>
    %cst_17 = arith.constant 0.000000e+00 : f32
    %22 = vector.broadcast %cst_17 : f32 to vector<128x128xf32>
    %23 = arith.maximumf %21, %22 : vector<128x128xf32>
    %24 = vector.shape_cast %6 : vector<1x128xf32> to vector<1x128xf32>
    %25 = vector.broadcast %24 : vector<1x128xf32> to vector<8x128xf32>
    %cst_18 = arith.constant dense<0.000000e+00> : vector<8x128xf32>
    %26 = tpu.matmul %25, %23, %cst_18 {dimension_numbers = #tpu.dot_dimension_numbers<[1], [1], [0], [0], [0, 0, 1, 0], [], []>} : vector<8x128xf32>, vector<128x128xf32>, vector<8x128xf32> -> vector<8x128xf32>
    %27 = vector.extract_strided_slice %26 {offsets = [0, 0], sizes = [1, 128], strides = [1, 1]} : vector<8x128xf32> to vector<1x128xf32>
    %28 = vector.broadcast %7 : vector<1x1xf32> to vector<1x128xf32>
    %29 = arith.addf %27, %28 : vector<1x128xf32>
    %c0_19 = arith.constant 0 : index
    %c0_20 = arith.constant 0 : index
    %30 = vector.load %arg7[%c0_19, %c0_20] : memref<1x128xf32, #tpu.memory_space<vmem>>, vector<1x128xf32>
    tpu.vector_store %arg7[%c0_19, %c0_20], %29 {strides = array<i32>} : memref<1x128xf32, #tpu.memory_space<vmem>>, vector<1x128xf32>,
    return
  }
  func.func @transform_0(%arg0: i32) -> (i32, i32) {
    %c0_i32 = arith.constant 0 : i32
    %c0_i32_0 = arith.constant 0 : i32
    return %arg0, %c0_i32 : i32, i32
  }
  func.func @transform_1(%arg0: i32) -> (i32, i32) {
    %c0_i32 = arith.constant 0 : i32
    %c0_i32_0 = arith.constant 0 : i32
    return %arg0, %c0_i32 : i32, i32
  }
  func.func @transform_2(%arg0: i32) -> (i32, i32) {
    %c0_i32 = arith.constant 0 : i32
    %c0_i32_0 = arith.constant 0 : i32
    %c0_i32_1 = arith.constant 0 : i32
    return %c0_i32, %c0_i32_0 : i32, i32
  }
  func.func @transform_3(%arg0: i32) -> (i32, i32) {
    %c0_i32 = arith.constant 0 : i32
    %c0_i32_0 = arith.constant 0 : i32
    %c0_i32_1 = arith.constant 0 : i32
    return %c0_i32, %c0_i32_0 : i32, i32
  }
  func.func @transform_4(%arg0: i32) -> (i32, i32) {
    %c0_i32 = arith.constant 0 : i32
    %c0_i32_0 = arith.constant 0 : i32
    %c0_i32_1 = arith.constant 0 : i32
    return %c0_i32, %c0_i32_0 : i32, i32
  }
  func.func @transform_5(%arg0: i32) -> (i32, i32) {
    %c0_i32 = arith.constant 0 : i32
    %c0_i32_0 = arith.constant 0 : i32
    %c0_i32_1 = arith.constant 0 : i32
    return %c0_i32, %c0_i32_0 : i32, i32
  }
  func.func @transform_6(%arg0: i32) -> (i32, i32) {
    %c0_i32 = arith.constant 0 : i32
    %c0_i32_0 = arith.constant 0 : i32
    return %c0_i32, %arg0 : i32, i32
  }
}

</mosaic_0001>

<bundles_post_ra>
// kernel: tpu_custom_call.1
= control target key start
LH: loop header
LB: loop body
LE: loop exit
PB: predicated region body
PF: predicated region fallthrough
CT: control target
= control target key end

     0   :  { %11 = vsyncpa [#allocation3], 0  ;;  %s1913_s0 = inlined_call_operand.vmem [shape: f32[200,24], index: 0, kind: input, shape index: {}]   ;;  %s1914_s1 = inlined_call_operand.vmem [shape: f32[200,8], index: 1, kind: input, shape index: {}]   ;;  %s1915_s2 = inlined_call_operand.vmem [shape: bf16[24,256], index: 2, kind: input, shape index: {}]   ;;  %s1916_s3 = inlined_call_operand.vmem [shape: bf16[8,256], index: 3, kind: input, shape index: {}]   ;;  %s1917_s4 = inlined_call_operand.vmem [shape: bf16[256,128], index: 4, kind: input, shape index: {}]   ;;  %s1918_s5 = inlined_call_operand.vmem [shape: f32[3,256], index: 5, kind: input, shape index: {}]   ;;  %s1919_s6 = inlined_call_operand.hbm [shape: f32[1,256], index: 6, kind: output, shape index: {}]  }
   0x1   :  { %13 = vsyncpa [#allocation3 + $0x1], 0  ;;  %s1523_s21 = smov 0   ;;  %s1525_s22 = smov 0  }
   0x2   :  { %s1527_s23 = smov 0   ;;  %s1529_s24 = smov 0  }
   0x3 LB: > { %s1182_s25 = sadd.s32 4294967295, %s1481_s24   ;;  %s1183_s26 = sadd.s32 4294967294, %s1481_s24   ;;  %s1481_s24 = sphi %s1529_s24, %s1925_s24   ;;  %s1477_s23 = sphi %s1527_s23, %s1924_s23   ;;  %s1473_s22 = sphi %s1525_s22, %s1923_s22   ;;  %s1469_s21 = sphi %s1523_s21, %s1922_s21  }
   0x4   : > { %s1546_s27 = sadd.s32 1, %s1481_s24   ;;  %s162_s28 = sadd.s32 1, %s1477_s23 }
   0x5   : > { %s159_s29 = ssub.s32 %s1481_s24, %s1546_s27  ;;  %p172_p0 = scmp.ne.s32.totalorder %s1477_s23, %s1473_s22 }
   0x6   : > { %p160_p1 = scmp.eq.s32.totalorder %s159_s29, 0  ;;  %p173_p2 = scmp.eq.s32.totalorder %s1182_s25, 1 }
   0x7   : > { %p178_p3 = scmp.ne.s32.totalorder %s1473_s22, %s1469_s21  ;;  %p179_p4 = scmp.eq.s32.totalorder %s1183_s26, 1 }
   0x8   : > { %s1556_s30 = scalar_select %p160_p1, %s1477_s23, %s162_s28  }
   0x9   : > { %p1558_p5 = por %p173_p2, %p172_p0  ;;  %p1562_p6 = por %p179_p4, %p178_p3 }
   0xa   : > { %p1186_p7 = scmp.ge.s32.totalorder %s1481_s24, 1  ;;  %p243_p8 = scmp.lt.s32.totalorder %s1481_s24, 3 }
   0xc   : > { %p244_p9 = pnand %p1186_p7, %p243_p8 }
   0xd   : > { %s1571_s11 = sshll.u32 (!%p244_p9), %s1182_s25, 4  ;;  %s283_s25 = sand.u32 (!%p244_p9), 1, %s1473_s22  }
   0xe   : > { %247 = sbr.rel (%p244_p9) target bundleno = 798 (0x31e), region = 44  ;;  %p290_p10 = scmp.lt.s32.totalorder (!%p244_p9), %s1571_s11, 24 }
   0xf   : > { %s284_s26 = scalar_lea.vmem (!%p244_p9), [#allocation2], %s283_s25  ;;  %s1878_s10 = scalar_lea.hbm (!%p244_p9), %s1919_s6, %s1571_s11 }
  0x10   : > { %s1116_s28 = sshll.u32 (!%p244_p9), %s284_s26, 4  ;;  %s1104_s12 = scalar_lea.sflag (!%p244_p9), [#allocation3], %s283_s25  ;;  %s1117_s28 = int_to_ptr.vmem [resolvable:$true] %s1116_s28 }
  0x11   : > { %s1421_s13 = scalar_lea.vmem (!%p244_p9), %s1117_s28, 16 }
  0x12   : > { %p1422_p11 = scmp.ne.s32.totalorder (!%p244_p9), %s1117_s28, %s1421_s13 }
  0x13   : > { %v369_v0 = vld [vmem:[%s1916_s3] sm:$0xff]  ;;  %vm400_vm0 = vcmask 1043456   ;;  %v368_v1 = vld [vmem:[%s1915_s2 + $0x10] sm:$0xff]  ;;  %v1483_v4 = vmov 0   ;;  %s1583_s14 = scalar_select %p290_p10, %s1571_s11, 24  ;;  %vm375_vm1 = vcmask 64512  }
  0x14   : > { %v1192_v2 = vcombine.high %v369_v0, %v369_v0  ;;  %v1191_v3 = vcombine.low %v369_v0, %v369_v0  ;;  %479 = vmatprep.mubr.bf16.mxu1 %v1483_v4  ;;  %v1205_v5 = vcombine.high %v368_v1, %v368_v1  ;;  %439 = vmatprep.mubr.bf16.mxu0 %v1483_v4  ;;  %v1404_v12 = vld [vmem:[%s1915_s2 + $0x4] ss:$8 sps:$4 sm:$0xff]   ;;  %v1402_v17 = vld [vmem:[%s1915_s2] ss:$8 sps:$4 sm:$0xff]   ;;  %vm535_vm2 = vcmask 195584   ;;  %v1405_v56 = vld [vmem:[%s1917_s4 + $0x78] sm:$0xff]   ;;  %p1423_p12 = pnand %p1422_p11, %p1558_p5 }
  0x15   : > { %1397 = vset.pattern.permute.xlu0 %v1483_v4  ;;  %v1204_v7 = vcombine.low %v368_v1, %v368_v1  ;;  %s1188_s15 = sshll.u32 %s1583_s14, 3  ;;  %v1406_v57 = vld [vmem:[%s1917_s4 + $0x38] sm:$0xff]   ;;  %v1407_v60 = vld [vmem:[%s1917_s4 + $0x70] sm:$0xff]   ;;  %v1409_v63 = vld [vmem:[%s1917_s4 + $0x68] sm:$0xff]   ;;  %vm1485_vm3 = vmmov 0   ;;  %s1487_s14 = smov [#allocation2]  }
  0x16   : > { %1352 = vmatprep.subr.msk.bf16.mxu1 %vm400_vm0, %v1192_v2  ;;  %v402_v6 = vsel %vm400_vm0, %v1191_v3, 0  ;;  %1193 = vmatprep.subr.msk.bf16.mxu0 %vm400_vm0, %v1192_v2  ;;  %s1593_s18 = scalar_lea.vmem %s1914_s1, %s1188_s15  ;;  %s1635_s9 = scalar_lea.vmem %s1913_s0, %s1188_s15  ;;  %v1408_v61 = vld [vmem:[%s1917_s4 + $0x30] sm:$0xff]   ;;  %v1410_v0 = vld [vmem:[%s1917_s4 + $0x28] sm:$0xff]   ;;  %v1411_v1 = vld [vmem:[%s1917_s4 + $0x60] sm:$0xff]  }
  0x17   : > { %1353 = vmatpush1.bf16.msra.mxu1 %v402_v6  ;;  %422 = vmatpush1.bf16.msra.mxu0 %v402_v6  ;;  %v346_v8 = vld [vmem:[%s1593_s18 + $0x40] sm:$0xff]  ;;  %v347_v9 = vld [vmem:[%s1593_s18 + $0x48] sm:$0xff]  ;;  %v561_v11 = vsel %vm400_vm0, %v1204_v7, 0  ;;  %v348_v15 = vld [vmem:[%s1593_s18 + $0x50] sm:$0xff]  ;;  %p1424_p13 = pneg %p1423_p12  ;;  %s1425_s15 = sshll.u32 %s1487_s14, 4  ;;  %s1426_s15 = int_to_ptr.vmem [resolvable:$false] %s1425_s15 }
  0x18   : > { %1206 = vmatprep.subr.msk.bf16.mxu1 %vm400_vm0, %v1205_v5  ;;  %v358_v10 = vpack.c.bf16 %v347_v9, %v346_v8  ;;  %v338_v13 = vld [vmem:[%s1593_s18] sm:$0xff]  ;;  %v339_v14 = vld [vmem:[%s1593_s18 + $0x8] sm:$0xff]  ;;  %v349_v16 = vld [vmem:[%s1593_s18 + $0x58] sm:$0xff]  ;;  %1236 = vmatprep.subr.bf16.mxu0 %v1405_v56  ;;  %s1427_s16 = scalar_lea.vmem %s1426_s15, 32  ;;  %p1428_p0 = scmp.lt.s32.totalorder %s1117_s28, %s1426_s15 }
  0x19   : > { %v354_v18 = vpack.c.bf16 %v339_v14, %v338_v13  ;;  %v359_v19 = vpack.c.bf16 %v349_v16, %v348_v15  ;;  %v340_v20 = vld [vmem:[%s1593_s18 + $0x10] sm:$0xff]  ;;  %v341_v21 = vld [vmem:[%s1593_s18 + $0x18] sm:$0xff]  ;;  %v350_v22 = vld [vmem:[%s1593_s18 + $0x60] sm:$0xff]  ;;  %p1429_p1 = scmp.lt.s32.totalorder %s1427_s16, %s1421_s13 }
  0x1a   : > { %1198 = vmatmul.mubr.msk.bf16.vlgmr.msra.gmra.mxu1 %vm375_vm1, %v358_v10  ;;  %v351_v23 = vld [vmem:[%s1593_s18 + $0x68] sm:$0xff]  ;;  %v355_v24 = vpack.c.bf16 %v341_v21, %v340_v20  ;;  %v342_v25 = vld [vmem:[%s1593_s18 + $0x20] sm:$0xff]  ;;  %v352_v29 = vld [vmem:[%s1593_s18 + $0x70] sm:$0xff] }
  0x1b   : > { %579 = vmatpush1.bf16.msra.mxu1 %v561_v11  ;;  %489 = vmatprep.mubr.bf16.mxu1 %v1483_v4  ;;  %v343_v26 = vld [vmem:[%s1593_s18 + $0x28] sm:$0xff]  ;;  %v360_v27 = vpack.c.bf16 %v351_v23, %v350_v22  ;;  %v353_v30 = vld [vmem:[%s1593_s18 + $0x78] sm:$0xff]  ;;  %v344_v32 = vld [vmem:[%s1593_s18 + $0x30] sm:$0xff]  ;;  %p1430_p2 = por %p1429_p1, %p1428_p0 }
  0x1c   : > { %580 = vmatprep.subr.bf16.mxu1 %v1404_v12  ;;  %1194 = vmatmul.mubr.msk.bf16.vlgmr.msra.gmra.mxu0 %vm375_vm1, %v354_v18  ;;  %v356_v28 = vpack.c.bf16 %v343_v26, %v342_v25  ;;  %v361_v31 = vpack.c.bf16 %v353_v30, %v352_v29  ;;  %v345_v33 = vld [vmem:[%s1593_s18 + $0x38] sm:$0xff]  ;;  %v314_v35 = vld [vmem:[%s1635_s9] sm:$0xff]  ;;  %v315_v36 = vld [vmem:[%s1635_s9 + $0x8] sm:$0xff]  ;;  %v680_v30 = vlaneseq }
  0x1d   : > { %449 = vmatprep.mubr.bf16.mxu0 %v1483_v4  ;;  %v357_v34 = vpack.c.bf16 %v345_v33, %v344_v32  ;;  %v330_v37 = vpack.c.bf16 %v315_v36, %v314_v35  ;;  %v316_v38 = vld [vmem:[%s1635_s9 + $0x10] sm:$0xff]  ;;  %v317_v39 = vld [vmem:[%s1635_s9 + $0x18] sm:$0xff]  ;;  %v318_v41 = vld [vmem:[%s1635_s9 + $0x20] sm:$0xff]  ;;  %1237 = vmatpush3.bf16.msra.mxu0 %v1406_v57  ;;  %p1431_p3 = pnand %p1430_p2, %p1424_p13 }
  0x1e   : > { %v331_v40 = vpack.c.bf16 %v317_v39, %v316_v38  ;;  %v319_v42 = vld [vmem:[%s1635_s9 + $0x28] sm:$0xff]  ;;  %v320_v44 = vld [vmem:[%s1635_s9 + $0x30] sm:$0xff]  ;;  %v321_v45 = vld [vmem:[%s1635_s9 + $0x38] sm:$0xff]  ;;  %1238 = vmatprep.subr.bf16.mxu0 %v1407_v60 }
  0x1f   : > { %581 = vmatpush1.bf16.msra.mxu1 %v1402_v17  ;;  %v332_v43 = vpack.c.bf16 %v319_v42, %v318_v41  ;;  %v333_v46 = vpack.c.bf16 %v321_v45, %v320_v44  ;;  %v322_v47 = vld [vmem:[%s1635_s9 + $0x40] sm:$0xff]  ;;  %v323_v48 = vld [vmem:[%s1635_s9 + $0x48] sm:$0xff]  ;;  %v324_v50 = vld [vmem:[%s1635_s9 + $0x50] sm:$0xff] }
  0x20   : > { %v334_v49 = vpack.c.bf16 %v323_v48, %v322_v47  ;;  %v325_v51 = vld [vmem:[%s1635_s9 + $0x58] sm:$0xff]  ;;  %v326_v53 = vld [vmem:[%s1635_s9 + $0x60] sm:$0xff]  ;;  %v327_v54 = vld [vmem:[%s1635_s9 + $0x68] sm:$0xff] }
  0x21   : > { %v335_v52 = vpack.c.bf16 %v325_v51, %v324_v50  ;;  %v336_v55 = vpack.c.bf16 %v327_v54, %v326_v53  ;;  %v328_v58 = vld [vmem:[%s1635_s9 + $0x70] sm:$0xff]  ;;  %v329_v59 = vld [vmem:[%s1635_s9 + $0x78] sm:$0xff]  ;;  %1239 = vmatpush3.bf16.msra.mxu0 %v1408_v61  ;;  %v1412_v2 = vld [vmem:[%s1917_s4 + $0x20] sm:$0xff]  }
  0x22   : > { %1199 = vmatmul.mubr.msk.bf16.gmra.mxu1 %vm375_vm1, %v359_v19  ;;  %v337_v62 = vpack.c.bf16 %v329_v59, %v328_v58  ;;  %1240 = vmatprep.subr.bf16.mxu0 %v1409_v63  ;;  %v1413_v3 = vld [vmem:[%s1917_s4 + $0x58] sm:$0xff]   ;;  %v1415_v5 = vld [vmem:[%s1917_s4 + $0x50] sm:$0xff]   ;;  %v1417_v7 = vld [vmem:[%s1917_s4 + $0x48] sm:$0xff]  }
  0x23   : > { %499 = vmatprep.mubr.bf16.mxu1 %v1483_v4  ;;  %v1416_v6 = vld [vmem:[%s1917_s4 + $0x10] sm:$0xff]   ;;  %v1418_v8 = vld [vmem:[%s1917_s4 + $0x8] sm:$0xff]   ;;  %v1419_v9 = vld [vmem:[%s1917_s4 + $0x40] sm:$0xff]  }
  0x24   : > { %1195 = vmatmul.mubr.msk.bf16.gmra.mxu0 %vm375_vm1, %v355_v24  ;;  %v1420_v10 = vld [vmem:[%s1917_s4] sm:$0xff]  }
  0x25   : > { %459 = vmatprep.mubr.bf16.mxu0 %v1483_v4  ;;  %1241 = vmatpush3.bf16.msra.mxu0 %v1410_v0 }
  0x26   : > { %1242 = vmatprep.subr.bf16.mxu0 %v1411_v1 }
  0x29   : > { %1243 = vmatpush3.bf16.msra.mxu0 %v1412_v2 }
  0x2a   : > { %1200 = vmatmul.mubr.msk.bf16.gmra.mxu1 %vm375_vm1, %v360_v27  ;;  %1244 = vmatprep.subr.bf16.mxu0 %v1413_v3 }
  0x2b   : > { %509 = vmatprep.mubr.bf16.mxu1 %v1483_v4 }
  0x2c   : > { %1196 = vmatmul.mubr.msk.bf16.gmra.mxu0 %vm375_vm1, %v356_v28 }
  0x2d   : > { %469 = vmatprep.mubr.bf16.mxu0 %v1483_v4 }
  0x32   : > { %1201 = vmatmul.mubr.msk.bf16.gmra.mxu1 %vm375_vm1, %v361_v31 }
  0x33   : > { %598 = vmatprep.mubr.bf16.mxu1 %v1483_v4 }
  0x34   : > { %1197 = vmatmul.mubr.msk.bf16.gmra.mxu0 %vm375_vm1, %v357_v34  ;;  %v1749_v34 = vshrl.u32 %v680_v30, 7 }
  0x36   : > { %v682_v39 = vsub.s32 0, %v1749_v34 }
  0x3a   : > { %1207 = vmatmul.mubr.msk.bf16.vlgmr.msra.gmra.mxu1 %vm535_vm2, %v330_v37  ;;  %v686_v37 = vsub.s32 1, %v1749_v34 }
  0x3b   : > { %608 = vmatprep.mubr.bf16.mxu1 %v1483_v4 }
  0x42   : > { %1208 = vmatmul.mubr.msk.bf16.gmra.mxu1 %vm535_vm2, %v331_v40  ;;  %v362_v40 = vld [vmem:[%s1918_s5] ss:$4 sm:$0x3] }
  0x43   : > { %618 = vmatprep.mubr.bf16.mxu1 %v1483_v4  ;;  %v1758_v44 = vrot.slane %v362_v40, %v686_v37 }
  0x4a   : > { %1209 = vmatmul.mubr.msk.bf16.gmra.mxu1 %vm535_vm2, %v332_v43 }
  0x4b   : > { %628 = vmatprep.mubr.bf16.mxu1 %v1483_v4 }
  0x52   : > { %1210 = vmatmul.mubr.msk.bf16.gmra.mxu1 %vm535_vm2, %v333_v46  ;;  %v1760_v46 = vrot.slane %v362_v40, %v682_v39 }
  0x53   : > { %638 = vmatprep.mubr.bf16.mxu1 %v1483_v4 }
  0x5a   : > { %1211 = vmatmul.mubr.msk.bf16.gmra.mxu1 %vm535_vm2, %v334_v49 }
  0x5b   : > { %648 = vmatprep.mubr.bf16.mxu1 %v1483_v4 }
  0x62   : > { %1212 = vmatmul.mubr.msk.bf16.gmra.mxu1 %vm535_vm2, %v335_v52 }
  0x63   : > { %658 = vmatprep.mubr.bf16.mxu1 %v1483_v4 }
  0x6a   : > { %1213 = vmatmul.mubr.msk.bf16.gmra.mxu1 %vm535_vm2, %v336_v55 }
  0x6b   : > { %668 = vmatprep.mubr.bf16.mxu1 %v1483_v4  ;;  %v1414_v4 = vld [vmem:[%s1917_s4 + $0x18] sm:$0xff]  }
  0x6c   : > { %1245 = vmatpush3.bf16.msra.mxu0 %v1414_v4 }
  0x6d   : > { %1246 = vmatprep.subr.bf16.mxu0 %v1415_v5 }
  0x70   : > { %1247 = vmatpush3.bf16.msra.mxu0 %v1416_v6 }
  0x71   : > { %1248 = vmatprep.subr.bf16.mxu0 %v1417_v7 }
  0x72   : > { %1214 = vmatmul.mubr.msk.bf16.gmra.mxu1 %vm535_vm2, %v337_v62 }
  0x74   : > { %1249 = vmatpush3.bf16.msra.mxu0 %v1418_v8 }
  0x75   : > { %1250 = vmatprep.subr.bf16.mxu0 %v1419_v9 }
  0x78   : > { %1251 = vmatpush3.bf16.msra.mxu0 %v1420_v10 }
  0xda   : > { %v1719_v11 = vpop.f32.mrf.mxu1 }
  0xdc   : > { %v1721_v12 = vpop.f32.mrf.mxu1  ;;  %v441_v13 = vpop.f32.mrf.mxu0 }
  0xde   : > { %v1723_v14 = vpop.f32.mrf.mxu1  ;;  %v443_v16 = vpop.f32.mrf.mxu0 }
  0xe0   : > { %v1725_v15 = vpop.f32.mrf.mxu1  ;;  %v445_v19 = vpop.f32.mrf.mxu0 }
  0xe2   : > { %v1727_v17 = vpop.f32.mrf.mxu1  ;;  %v447_v22 = vpop.f32.mrf.mxu0 }
  0xe4   : > { %v1729_v18 = vpop.f32.mrf.mxu1  ;;  %v451_v25 = vpop.f32.mrf.mxu0 }
  0xe6   : > { %v1731_v20 = vpop.f32.mrf.mxu1  ;;  %v453_v28 = vpop.f32.mrf.mxu0 }
  0xe8   : > { %v1733_v21 = vpop.f32.mrf.mxu1  ;;  %v455_v32 = vpop.f32.mrf.mxu0 }
  0xea   : > { %v1735_v23 = vpop.f32.mrf.mxu1  ;;  %v457_v36 = vpop.f32.mrf.mxu0 }
  0xec   : > { %v1737_v24 = vpop.f32.mrf.mxu1  ;;  %v461_v42 = vpop.f32.mrf.mxu0 }
  0xee   : > { %v1739_v26 = vpop.f32.mrf.mxu1  ;;  %v463_v50 = vpop.f32.mrf.mxu0 }
  0xf0   : > { %v1741_v27 = vpop.f32.mrf.mxu1  ;;  %v465_v59 = vpop.f32.mrf.mxu0 }
  0xf2   : > { %v1743_v29 = vpop.f32.mrf.mxu1  ;;  %v467_v6 = vpop.f32.mrf.mxu0 }
  0xf4   : > { %v1745_v31 = vpop.f32.mrf.mxu1 }
  0xf6   : > { %v1747_v33 = vpop.f32.mrf.mxu1 }
  0xf8   : > { %v1751_v35 = vpop.f32.mrf.mxu1 }
  0xfa   : > { %v600_v38 = vpop.f32.mrf.mxu1 }
  0xfb   : > { %v601_v45 = vadd.f32 %v600_v38, %v441_v13 }
  0xfc   : > { %v602_v41 = vpop.f32.mrf.mxu1 }
  0xfd   : > { %v603_v43 = vadd.f32 %v602_v41, %v443_v16  ;;  %v690_v54 = vadd.f32 %v1760_v46, %v601_v45 }
  0xfe   : > { %v604_v47 = vpop.f32.mrf.mxu1 }
  0xff   : > { %v605_v48 = vadd.f32 %v604_v47, %v445_v19  ;;  %v691_v51 = vadd.f32 %v1758_v44, %v603_v43  ;;  %v722_v63 = vmax.f32 %v690_v54, 0.0 }
 0x100   : > { %v606_v49 = vpop.f32.mrf.mxu1 }
 0x101   : > { %v692_v52 = vadd.f32 %v1760_v46, %v605_v48  ;;  %v607_v53 = vadd.f32 %v606_v49, %v447_v22  ;;  %v723_v60 = vmax.f32 %v691_v51, 0.0  ;;  %v471_v22 = vpop.f32.mrf.mxu0 }
 0x102   : > { %v610_v55 = vpop.f32.mrf.mxu1 }
 0x103   : > { %v693_v56 = vadd.f32 %v1758_v44, %v607_v53  ;;  %v724_v57 = vmax.f32 %v692_v52, 0.0  ;;  %v611_v0 = vadd.f32 %v610_v55, %v451_v25  ;;  %v473_v43 = vpop.f32.mrf.mxu0 }
 0x104   : > { %v612_v58 = vpop.f32.mrf.mxu1 }
 0x105   : > { %v725_v61 = vmax.f32 %v693_v56, 0.0  ;;  %v613_v62 = vadd.f32 %v612_v58, %v453_v28  ;;  %v754_v4 = vpack.c.bf16 %v724_v57, %v722_v63  ;;  %v694_v10 = vadd.f32 %v1760_v46, %v611_v0 }
 0x106   : > { %v614_v1 = vpop.f32.mrf.mxu1 }
 0x107   : > { %v615_v2 = vadd.f32 %v614_v1, %v455_v32  ;;  %v755_v3 = vpack.c.bf16 %v725_v61, %v723_v60  ;;  %v695_v7 = vadd.f32 %v1758_v44, %v613_v62  ;;  %v726_v37 = vmax.f32 %v694_v10, 0.0 }
 0x108   : > { %v616_v5 = vpop.f32.mrf.mxu1 }
 0x109   : > { %v696_v8 = vadd.f32 %v1760_v46, %v615_v2  ;;  %v617_v9 = vadd.f32 %v616_v5, %v457_v36  ;;  %934 = vmatprep.mubr.bf16.mxu0 %v755_v3  ;;  %v727_v28 = vmax.f32 %v695_v7, 0.0 }
 0x10a   : > { %v620_v13 = vpop.f32.mrf.mxu1  ;;  %935 = vmatmul.mubr.bf16.vlgmr.msra.gmra.mxu0 %v754_v4 }
 0x10b   : > { %v697_v16 = vadd.f32 %v1758_v44, %v617_v9  ;;  %v728_v19 = vmax.f32 %v696_v8, 0.0  ;;  %v621_v38 = vadd.f32 %v620_v13, %v461_v42  ;;  %v475_v42 = vpop.f32.mrf.mxu0 }
 0x10c   : > { %v622_v25 = vpop.f32.mrf.mxu1 }
 0x10d   : > { %v729_v30 = vmax.f32 %v697_v16, 0.0  ;;  %v623_v32 = vadd.f32 %v622_v25, %v463_v50  ;;  %v756_v45 = vpack.c.bf16 %v728_v19, %v726_v37  ;;  %v698_v51 = vadd.f32 %v1760_v46, %v621_v38  ;;  %v477_v63 = vpop.f32.mrf.mxu0 }
 0x10e   : > { %v624_v39 = vpop.f32.mrf.mxu1 }
 0x10f   : > { %v625_v40 = vadd.f32 %v624_v39, %v465_v59  ;;  %v757_v41 = vpack.c.bf16 %v729_v30, %v727_v28  ;;  %v699_v47 = vadd.f32 %v1758_v44, %v623_v32  ;;  %v730_v58 = vmax.f32 %v698_v51, 0.0 }
 0x110   : > { %v626_v36 = vpop.f32.mrf.mxu1 }
 0x111   : > { %v700_v48 = vadd.f32 %v1760_v46, %v625_v40  ;;  %v627_v49 = vadd.f32 %v626_v36, %v467_v6  ;;  %942 = vmatprep.mubr.bf16.mxu0 %v757_v41  ;;  %v731_v55 = vmax.f32 %v699_v47, 0.0 }
 0x112   : > { %v630_v52 = vpop.f32.mrf.mxu1  ;;  %943 = vmatmul.mubr.bf16.gmra.mxu0 %v756_v45 }
 0x113   : > { %v701_v50 = vadd.f32 %v1758_v44, %v627_v49  ;;  %v732_v53 = vmax.f32 %v700_v48, 0.0  ;;  %v631_v59 = vadd.f32 %v630_v52, %v471_v22 }
 0x114   : > { %v632_v54 = vpop.f32.mrf.mxu1 }
 0x115   : > { %v733_v56 = vmax.f32 %v701_v50, 0.0  ;;  %v633_v57 = vadd.f32 %v632_v54, %v473_v43  ;;  %v758_v1 = vpack.c.bf16 %v732_v53, %v730_v58  ;;  %v702_v5 = vadd.f32 %v1760_v46, %v631_v59 }
 0x116   : > { %v634_v60 = vpop.f32.mrf.mxu1 }
 0x117   : > { %v635_v61 = vadd.f32 %v634_v60, %v475_v42  ;;  %v759_v62 = vpack.c.bf16 %v733_v56, %v731_v55  ;;  %v703_v2 = vadd.f32 %v1758_v44, %v633_v57  ;;  %v734_v22 = vmax.f32 %v702_v5, 0.0 }
 0x118   : > { %v636_v0 = vpop.f32.mrf.mxu1 }
 0x119   : > { %v704_v3 = vadd.f32 %v1760_v46, %v635_v61  ;;  %v637_v4 = vadd.f32 %v636_v0, %v477_v63  ;;  %950 = vmatprep.mubr.bf16.mxu0 %v759_v62  ;;  %v735_v13 = vmax.f32 %v703_v2, 0.0 }
 0x11a   : > { %v640_v6 = vpop.f32.mrf.mxu1  ;;  %951 = vmatmul.mubr.bf16.gmra.mxu0 %v758_v1 }
 0x11b   : > { %v705_v7 = vadd.f32 %v1758_v44, %v637_v4  ;;  %v641_v8 = vadd.f32 %v640_v6, %v1719_v11  ;;  %v736_v9 = vmax.f32 %v704_v3, 0.0 }
 0x11c   : > { %v642_v10 = vpop.f32.mrf.mxu1 }
 0x11d   : > { %v737_v16 = vmax.f32 %v705_v7, 0.0  ;;  %v643_v19 = vadd.f32 %v642_v10, %v1721_v12  ;;  %v706_v28 = vadd.f32 %v1760_v46, %v641_v8  ;;  %v760_v38 = vpack.c.bf16 %v736_v9, %v734_v22 }
 0x11e   : > { %v644_v25 = vpop.f32.mrf.mxu1 }
 0x11f   : > { %v645_v30 = vadd.f32 %v644_v25, %v1723_v14  ;;  %v761_v32 = vpack.c.bf16 %v737_v16, %v735_v13  ;;  %v707_v39 = vadd.f32 %v1758_v44, %v643_v19  ;;  %v738_v43 = vmax.f32 %v706_v28, 0.0 }
 0x120   : > { %v646_v37 = vpop.f32.mrf.mxu1 }
 0x121   : > { %v708_v40 = vadd.f32 %v1760_v46, %v645_v30  ;;  %v647_v11 = vadd.f32 %v646_v37, %v1725_v15  ;;  %958 = vmatprep.mubr.bf16.mxu0 %v761_v32  ;;  %v739_v14 = vmax.f32 %v707_v39, 0.0 }
 0x122   : > { %v650_v41 = vpop.f32.mrf.mxu1  ;;  %959 = vmatmul.mubr.bf16.gmra.mxu0 %v760_v38 }
 0x123   : > { %v740_v12 = vmax.f32 %v708_v40, 0.0  ;;  %v709_v36 = vadd.f32 %v1758_v44, %v647_v11  ;;  %v651_v45 = vadd.f32 %v650_v41, %v1727_v17 }
 0x124   : > { %v652_v47 = vpop.f32.mrf.mxu1 }
 0x125   : > { %v741_v48 = vmax.f32 %v709_v36, 0.0  ;;  %v653_v49 = vadd.f32 %v652_v47, %v1729_v18  ;;  %v762_v51 = vpack.c.bf16 %v740_v12, %v738_v43  ;;  %v710_v50 = vadd.f32 %v1760_v46, %v651_v45 }
 0x126   : > { %v654_v52 = vpop.f32.mrf.mxu1 }
 0x127   : > { %v655_v15 = vadd.f32 %v654_v52, %v1731_v20  ;;  %v763_v53 = vpack.c.bf16 %v741_v48, %v739_v14  ;;  %v711_v54 = vadd.f32 %v1758_v44, %v653_v49  ;;  %v742_v57 = vmax.f32 %v710_v50, 0.0 }
 0x128   : > { %v656_v42 = vpop.f32.mrf.mxu1 }
 0x129   : > { %v712_v55 = vadd.f32 %v1760_v46, %v655_v15  ;;  %v657_v56 = vadd.f32 %v656_v42, %v1733_v21  ;;  %966 = vmatprep.mubr.bf16.mxu0 %v763_v53  ;;  %v743_v61 = vmax.f32 %v711_v54, 0.0 }
 0x12a   : > { %v660_v17 = vpop.f32.mrf.mxu1  ;;  %967 = vmatmul.mubr.bf16.gmra.mxu0 %v762_v51 }
 0x12b   : > { %v744_v58 = vmax.f32 %v712_v55, 0.0  ;;  %v713_v18 = vadd.f32 %v1758_v44, %v657_v56  ;;  %v661_v59 = vadd.f32 %v660_v17, %v1735_v23 }
 0x12c   : > { %v662_v60 = vpop.f32.mrf.mxu1 }
 0x12d   : > { %v745_v20 = vmax.f32 %v713_v18, 0.0  ;;  %v663_v62 = vadd.f32 %v662_v60, %v1737_v24  ;;  %v764_v63 = vpack.c.bf16 %v744_v58, %v742_v57  ;;  %v714_v1 = vadd.f32 %v1760_v46, %v661_v59 }
 0x12e   : > { %v664_v0 = vpop.f32.mrf.mxu1 }
 0x12f   : > { %v665_v21 = vadd.f32 %v664_v0, %v1739_v26  ;;  %v765_v2 = vpack.c.bf16 %v745_v20, %v743_v61  ;;  %v715_v4 = vadd.f32 %v1758_v44, %v663_v62  ;;  %v746_v7 = vmax.f32 %v714_v1, 0.0 }
 0x130   : > { %v666_v3 = vpop.f32.mrf.mxu1 }
 0x131   : > { %v716_v5 = vadd.f32 %v1760_v46, %v665_v21  ;;  %v667_v6 = vadd.f32 %v666_v3, %v1741_v27  ;;  %974 = vmatprep.mubr.bf16.mxu0 %v765_v2  ;;  %v747_v13 = vmax.f32 %v715_v4, 0.0 }
 0x132   : > { %v670_v23 = vpop.f32.mrf.mxu1  ;;  %975 = vmatmul.mubr.bf16.gmra.mxu0 %v764_v63 }
 0x133   : > { %v748_v8 = vmax.f32 %v716_v5, 0.0  ;;  %v717_v24 = vadd.f32 %v1758_v44, %v667_v6  ;;  %v671_v9 = vadd.f32 %v670_v23, %v1743_v29 }
 0x134   : > { %v672_v10 = vpop.f32.mrf.mxu1 }
 0x135   : > { %v749_v26 = vmax.f32 %v717_v24, 0.0  ;;  %v673_v16 = vadd.f32 %v672_v10, %v1745_v31  ;;  %v766_v19 = vpack.c.bf16 %v748_v8, %v746_v7  ;;  %v718_v25 = vadd.f32 %v1760_v46, %v671_v9 }
 0x136   : > { %v674_v22 = vpop.f32.mrf.mxu1 }
 0x137   : > { %v675_v27 = vadd.f32 %v674_v22, %v1747_v33  ;;  %v767_v28 = vpack.c.bf16 %v749_v26, %v747_v13  ;;  %v719_v32 = vadd.f32 %v1758_v44, %v673_v16  ;;  %v750_v29 = vmax.f32 %v718_v25, 0.0  ;;  %v1830_v13 = vld [vmem:[%s1918_s5 + $0x1] ss:$0 sm:$0xff] }
 0x138   : > { %v676_v30 = vpop.f32.mrf.mxu1  ;;  %v1484_v33 = vmov 0.0  }
 0x139   : > { %v720_v37 = vadd.f32 %v1760_v46, %v675_v27  ;;  %v677_v38 = vadd.f32 %v676_v30, %v1751_v35  ;;  %982 = vmatprep.mubr.bf16.mxu0 %v767_v28  ;;  %v751_v40 = vmax.f32 %v719_v32, 0.0  ;;  %1317 = vmatprep.subr.mxu1 %v1484_v33 }
 0x13a   : > { %983 = vmatmul.mubr.bf16.gmra.mxu0 %v766_v19  ;;  %1349 = vmatprep.mubr.msk.f32.mxu1 %vm1485_vm3, %v1484_v33 }
 0x13b   : > { %v752_v39 = vmax.f32 %v720_v37, 0.0  ;;  %v721_v31 = vadd.f32 %v1758_v44, %v677_v38  ;;  %v365_v44 = vld [vmem:[%s1918_s5 + $0x2] sm:$0x1] }
 0x13c   : > { %1091 = vperm.xlu0 %1397, %v365_v44  }
 0x13d   : > { %v753_v11 = vmax.f32 %v721_v31, 0.0  ;;  %v768_v41 = vpack.c.bf16 %v752_v39, %v750_v29 }
 0x13f   : > { %v769_v43 = vpack.c.bf16 %v753_v11, %v751_v40 }
 0x141   : > { %990 = vmatprep.mubr.bf16.mxu0 %v769_v43 }
 0x142   : > { %991 = vmatmul.mubr.bf16.gmra.mxu0 %v768_v41 }
 0x1ca   : > { %v1252_v12 = vpop.f32.mrf.mxu0 }
 0x1cc   : > { %v1253_v36 = vpop.f32.mrf.mxu0 }
 0x1cd   : > { %v1812_v35 = vadd.f32 %v1253_v36, %v1252_v12 }
 0x1ce   : > { %v1255_v46 = vpop.f32.mrf.mxu0 }
 0x1d0   : > { %v1256_v45 = vpop.f32.mrf.mxu0 }
 0x1d1   : > { %v1817_v47 = vadd.f32 %v1256_v45, %v1255_v46 }
 0x1d2   : > { %v1258_v14 = vpop.f32.mrf.mxu0 }
 0x1d4   : > { %v1259_v48 = vpop.f32.mrf.mxu0 }
 0x1d5   : > { %v1819_v49 = vadd.f32 %v1259_v48, %v1258_v14 }
 0x1d6   : > { %v1261_v51 = vpop.f32.mrf.mxu0 }
 0x1d8   : > { %v1262_v52 = vpop.f32.mrf.mxu0 }
 0x1d9   : > { %v1821_v50 = vadd.f32 %v1262_v52, %v1261_v51 }
 0x1da   : > { %v1264_v15 = vpop.f32.mrf.mxu0 }
 0x1dc   : > { %v1265_v53 = vpop.f32.mrf.mxu0 }
 0x1dd   : > { %v1823_v42 = vadd.f32 %v1265_v53, %v1264_v15 }
 0x1de   : > { %v1267_v54 = vpop.f32.mrf.mxu0 }
 0x1df   : > { %v953_v15 = vadd.f32 %v1823_v42, %v1830_v13  ;;  %v940_v42 = vadd.f32 %v1817_v47, %v1830_v13  ;;  %v1486_v47 = vmov 839922192  }
 0x1e0   : > { %v1268_v55 = vpop.f32.mrf.mxu0 }
 0x1e1   : > { %v1825_v56 = vadd.f32 %v1268_v55, %v1267_v54  ;;  %v948_v54 = vadd.f32 %v1821_v50, %v1830_v13  ;;  %v1003_v55 = vmax.f32 %v953_v15, 0.0  ;;  %v937_v50 = vadd.f32 %v1812_v35, %v1830_v13  ;;  %v1092_v35 = vpop.permute.xlu0 %1091 }
 0x1e2   : > { %v1270_v17 = vpop.f32.mrf.mxu0 }
 0x1e3   : > { %v956_v51 = vadd.f32 %v1825_v56, %v1830_v13  ;;  %v945_v56 = vadd.f32 %v1819_v49, %v1830_v13  ;;  %v999_v49 = vmax.f32 %v937_v50, 0.0 }
 0x1e4   : > { %v1271_v57 = vpop.f32.mrf.mxu0 }
 0x1e5   : > { %v1272_v58 = vadd.f32 %v1271_v57, %v1270_v17  ;;  %v1004_v53 = vmax.f32 %v956_v51, 0.0  ;;  %v1002_v17 = vmax.f32 %v948_v54, 0.0  ;;  %v1001_v57 = vmax.f32 %v945_v56, 0.0 }
 0x1e6   : > { %v1273_v18 = vpop.f32.mrf.mxu0 }
 0x1e7   : > { %v961_v14 = vadd.f32 %v1272_v58, %v1830_v13  ;;  %v1000_v58 = vmax.f32 %v940_v42, 0.0 }
 0x1e8   : > { %v1274_v59 = vpop.f32.mrf.mxu0 }
 0x1e9   : > { %v1275_v60 = vadd.f32 %v1274_v59, %v1273_v18  ;;  %v1005_v52 = vmax.f32 %v961_v14, 0.0  ;;  %v1232_v18 = vld [vmem:[%s1918_s5 + $0x5] ss:$0 sm:$0xff]  ;;  %v1095_v59 = vunpack.c.l.s4 %v1486_v47 }
 0x1ea   : > { %v1276_v61 = vpop.f32.mrf.mxu0 }
 0x1eb   : > { %v964_v44 = vadd.f32 %v1275_v60, %v1830_v13  ;;  %v1096_v60 = vunpack.c.0.s8 %v1095_v59 }
 0x1ec   : > { %v1277_v20 = vpop.f32.mrf.mxu0 }
 0x1ed   : > { %v1278_v41 = vadd.f32 %v1277_v20, %v1276_v61  ;;  %v1006_v48 = vmax.f32 %v964_v44, 0.0  ;;  %v1099_v61 = vsub.s32 %v1096_v60, %v1749_v34 }
 0x1ee   : > { %v1279_v62 = vpop.f32.mrf.mxu0 }
 0x1ef   : > { %v969_v36 = vadd.f32 %v1278_v41, %v1830_v13  ;;  %v1100_v20 = vrot.slane %v1092_v35, %v1099_v61 }
 0x1f0   : > { %v1280_v63 = vpop.f32.mrf.mxu0 }
 0x1f1   : > { %v1281_v31 = vadd.f32 %v1280_v63, %v1279_v62  ;;  %v1007_v45 = vmax.f32 %v969_v36, 0.0 }
 0x1f2   : > { %v1282_v0 = vpop.f32.mrf.mxu0 }
 0x1f3   : > { %v972_v43 = vadd.f32 %v1281_v31, %v1830_v13 }
 0x1f4   : > { %v1283_v1 = vpop.f32.mrf.mxu0 }
 0x1f5   : > { %v1284_v38 = vadd.f32 %v1283_v1, %v1282_v0  ;;  %v1008_v46 = vmax.f32 %v972_v43, 0.0 }
 0x1f6   : > { %v1285_v21 = vpop.f32.mrf.mxu0 }
 0x1f7   : > { %v977_v40 = vadd.f32 %v1284_v38, %v1830_v13 }
 0x1f8   : > { %v1286_v2 = vpop.f32.mrf.mxu0 }
 0x1f9   : > { %v1287_v30 = vadd.f32 %v1286_v2, %v1285_v21  ;;  %v1009_v12 = vmax.f32 %v977_v40, 0.0 }
 0x1fa   : > { %v1288_v3 = vpop.f32.mrf.mxu0 }
 0x1fb   : > { %v980_v29 = vadd.f32 %v1287_v30, %v1830_v13 }
 0x1fc   : > { %v1289_v4 = vpop.f32.mrf.mxu0 }
 0x1fd   : > { %v1290_v25 = vadd.f32 %v1289_v4, %v1288_v3  ;;  %v1010_v11 = vmax.f32 %v980_v29, 0.0 }
 0x1fe   : > { %v1291_v5 = vpop.f32.mrf.mxu0 }
 0x1ff   : > { %v985_v32 = vadd.f32 %v1290_v25, %v1830_v13 }
 0x200   : > { %v1292_v6 = vpop.f32.mrf.mxu0 }
 0x201   : > { %v1293_v16 = vadd.f32 %v1292_v6, %v1291_v5  ;;  %v1011_v39 = vmax.f32 %v985_v32, 0.0 }
 0x202   : > { %v1294_v23 = vpop.f32.mrf.mxu0 }
 0x203   : > { %v988_v27 = vadd.f32 %v1293_v16, %v1830_v13 }
 0x204   : > { %v1295_v7 = vpop.f32.mrf.mxu0 }
 0x205   : > { %v1296_v9 = vadd.f32 %v1295_v7, %v1294_v23  ;;  %v1012_v37 = vmax.f32 %v988_v27, 0.0 }
 0x206   : > { %v1297_v8 = vpop.f32.mrf.mxu0 }
 0x207   : > { %v993_v19 = vadd.f32 %v1296_v9, %v1830_v13 }
 0x208   : > { %v1298_v24 = vpop.f32.mrf.mxu0 }
 0x209   : > { %v1299_v10 = vadd.f32 %v1298_v24, %v1297_v8  ;;  %v1013_v28 = vmax.f32 %v993_v19, 0.0 }
 0x20b   : > { %v996_v26 = vadd.f32 %v1299_v10, %v1830_v13 }
 0x20d   : > { %v1014_v22 = vmax.f32 %v996_v26, 0.0 }
 0x20f   : > { %1318 = vmatpush3.xpose.msra.mxu1 %v1014_v22 }
 0x210   : > { %1319 = vmatprep.subr.mxu1 %v1484_v33 }
 0x213   : > { %1320 = vmatpush3.xpose.msra.mxu1 %v1013_v28 }
 0x214   : > { %1321 = vmatprep.subr.mxu1 %v1484_v33 }
 0x217   : > { %1322 = vmatpush3.xpose.msra.mxu1 %v1012_v37 }
 0x218   : > { %1323 = vmatprep.subr.mxu1 %v1484_v33 }
 0x21b   : > { %1324 = vmatpush3.xpose.msra.mxu1 %v1011_v39 }
 0x21c   : > { %1325 = vmatprep.subr.mxu1 %v1484_v33 }
 0x21f   : > { %1326 = vmatpush3.xpose.msra.mxu1 %v1010_v11 }
 0x220   : > { %1327 = vmatprep.subr.mxu1 %v1484_v33 }
 0x223   : > { %1328 = vmatpush3.xpose.msra.mxu1 %v1009_v12 }
 0x224   : > { %1329 = vmatprep.subr.mxu1 %v1484_v33 }
 0x227   : > { %1330 = vmatpush3.xpose.msra.mxu1 %v1008_v46 }
 0x228   : > { %1331 = vmatprep.subr.mxu1 %v1484_v33 }
 0x22b   : > { %1332 = vmatpush3.xpose.msra.mxu1 %v1007_v45 }
 0x22c   : > { %1333 = vmatprep.subr.mxu1 %v1484_v33 }
 0x22f   : > { %1334 = vmatpush3.xpose.msra.mxu1 %v1006_v48 }
 0x230   : > { %1335 = vmatprep.subr.mxu1 %v1484_v33 }
 0x233   : > { %1336 = vmatpush3.xpose.msra.mxu1 %v1005_v52 }
 0x234   : > { %1337 = vmatprep.subr.mxu1 %v1484_v33 }
 0x237   : > { %1338 = vmatpush3.xpose.msra.mxu1 %v1004_v53 }
 0x238   : > { %1339 = vmatprep.subr.mxu1 %v1484_v33 }
 0x23b   : > { %1340 = vmatpush3.xpose.msra.mxu1 %v1003_v55 }
 0x23c   : > { %1341 = vmatprep.subr.mxu1 %v1484_v33 }
 0x23f   : > { %1342 = vmatpush3.xpose.msra.mxu1 %v1002_v17 }
 0x240   : > { %1343 = vmatprep.subr.mxu1 %v1484_v33 }
 0x243   : > { %1344 = vmatpush3.xpose.msra.mxu1 %v1001_v57 }
 0x244   : > { %1345 = vmatprep.subr.mxu1 %v1484_v33 }
 0x247   : > { %1346 = vmatpush3.xpose.msra.mxu1 %v1000_v58 }
 0x248   : > { %1347 = vmatprep.subr.mxu1 %v1484_v33 }
 0x24b   : > { %1348 = vmatpush3.xpose.msra.mxu1 %v999_v49 }
 0x24e   : > { %1350 = vmatmul.mubr.f32.vlgmr.msra.gmra.mxu1 %v1232_v18 }
 0x30e   : > { %v1085_v33 = vpop.f32.mrf.mxu1 }
 0x30f   : > { %v1101_v62 = vadd.f32 %v1100_v20, %v1085_v33 }
 0x310   : > { %v1351_v63 = vpop.f32.mrf.mxu1 }
 0x311   : > { %1102 = vst [vmem:[%s284_s26] sm:$0x1] %v1101_v62 }
 0x312   : > { %1434 = shalt.err (!%p1431_p3)
}
 0x313   : > { %s1435_s11 = scalar_lea.hbm %s1878_s10, 16  ;;  %s1439_s19 = scalar_lea.hbm %s1919_s6, 32 }
 0x314   : > { %p1436_p4 = scmp.ne.s32.totalorder %s1878_s10, %s1435_s11  ;;  %p1440_p9 = scmp.lt.s32.totalorder %s1878_s10, %s1919_s6 }
 0x315   : > { %p1441_p10 = scmp.lt.s32.totalorder %s1439_s19, %s1435_s11 }
 0x316   : > { %p1437_p7 = pnand %p1436_p4, %p1558_p5 }
 0x317   : > { %p1442_p11 = por %p1441_p10, %p1440_p9 }
 0x318   : > { %p1438_p8 = pneg %p1437_p7 }
 0x31a   : > { %p1443_p12 = pnand %p1442_p11, %p1438_p8 }
 0x31c   : > { %1446 = shalt.err (!%p1443_p12)
}
 0x31d   : > { %1354 = dma.vmem_to_hbm [thread:$0]  (%p1558_p5), %s1117_s28, 16, %s1878_s10, %s1104_s12  }
 0x31e PF: > { %p1360_p13 = scmp.ge.s32.totalorder %s1481_s24, 2  ;;  %s1128_s26 = sand.u32 1, %s1469_s21  }
 0x31f   : > { %s1129_s29 = scalar_lea.sflag [#allocation3], %s1128_s26 }
 0x320   : > { %p1357_p0 = pnand %p1360_p13, %p1562_p6 }
 0x322   : > { %p1358_p1 = pneg %p1357_p0 }
 0x324   : > { %1464 = dma.done.wait (%p1358_p1), %s1129_s29, 16  }
 0x325   : > { %1466 = vsyncadd (%p1358_p1), %s1129_s29, 4294967280  ;;  %p16_p2 = scmp.ge.s32.totalorder %s1546_s27, 4   ;;  %s1922_s21 = smov %s1473_s22 }
 0x326   : > { %s1923_s22 = smov %s1477_s23  ;;  %s1924_s23 = smov %s1556_s30 }
 0x327   : > { %s1925_s24 = smov %s1546_s27  ;;  %18 = sbr.rel (!%p16_p2) target bundleno = 3 (0x3), region = 82 }
 0x32c   :  { %1133 = vsyncpa [#allocation3], 1 }
 0x32d   :  { %1135 = vsyncpa [#allocation3 + $0x1], 1 }

</bundles_post_ra>
